<compile_context>
chip_gen: v7x
topology: tpu7x:2x2x1
jax: 0.10.0
libtpu: 0.0.40
codegen_flags: <defaults>
</compile_context>

<pallas_src>
import jax
import jax.numpy as jnp
from jax.experimental import pallas as pl
from jax.experimental.pallas import tpu as pltpu

_MIB = 1024 * 1024


def _downpool_kernel(x_ref, w_ref, b_ref, o_ref):
    # x_ref: (K, TILE_L), w_ref: (N, K), b_ref: (N, 1) -> o_ref: (N, TILE_L)
    acc = jnp.dot(w_ref[...], x_ref[...], preferred_element_type=jnp.float32)
    o_ref[...] = (acc + b_ref[...].astype(jnp.float32)).astype(o_ref.dtype)


def _select_tile_l(l_out, k, n, in_itemsize, out_itemsize, w_itemsize,
                   budget_bytes=24 * _MIB, cap=8192):
    """Pick the L_out tile width.  Returns (tile_l, needs_pad).

    Preference order:
      1. the full L_out extent as a single block (no divisibility constraints),
      2. the largest 128-multiple divisor of L_out under the VMEM budget
         (exact tiling: no pad, no partial trailing block),
      3. rare fallback: a 128-multiple tile with pad-to-multiple + output slice.

    The budget accounts for: 2 pipeline buffers each for the x tile and y tile,
    the f32 dot temporary, and the (double-buffered) resident weight/bias.
    """
    per_col = 2 * k * in_itemsize + 2 * n * out_itemsize + n * 4
    fixed = 2 * n * k * w_itemsize + 2 * n * 4
    avail = max(budget_bytes - fixed, 128 * per_col)
    max_tile = max(avail // per_col, 128)

    if l_out <= cap and l_out <= max_tile:
        return l_out, False                      # single full-extent block along L_out

    hi = (int(min(cap, max_tile)) // 128) * 128
    t = hi
    while t >= 128:
        if l_out % t == 0:
            return t, False                      # exact tiling, no pad/slice
        t -= 128
    return max(hi, 128), True                    # fallback: pad + slice (rare shapes)


def downpool_forward(x, weight, bias, pool):
    """
    x:      [B, H, L]            (transposed=True layout, like the PyTorch module)
    weight: [d_output, H*pool]   (Conv1d kernel_size=1 weight, trailing dim squeezed)
    bias:   [d_output]
    returns (y, None), y: [B, d_output, L // pool], y.dtype == x.dtype
    """
    B, H, L = x.shape
    assert L % pool == 0, "seq_len must be divisible by pool"
    L_out = L // pool
    K = H * pool
    N = weight.shape[0]
    assert weight.shape == (N, K) and bias.shape == (N,)

    in_isz = jnp.dtype(x.dtype).itemsize
    w_isz = jnp.dtype(weight.dtype).itemsize
    out_dtype = x.dtype
    out_isz = jnp.dtype(out_dtype).itemsize

    # rearrange '... h (l s) -> ... (h s) l'  (channels-first, lane axis = L_out).
    # Single XLA transpose; see TODO above about folding this into the kernel.
    xr = x.reshape(B, H, L_out, pool)
    xr = jnp.transpose(xr, (0, 1, 3, 2)).reshape(B, K, L_out)

    tile_l, needs_pad = _select_tile_l(L_out, K, N, in_isz, out_isz, w_isz)
    L_grid = L_out
    if needs_pad:
        L_grid = pl.cdiv(L_out, tile_l) * tile_l
        xr = jnp.pad(xr, ((0, 0), (0, 0), (0, L_grid - L_out)))

    b2 = bias.reshape(N, 1)
    grid = (B, L_grid // tile_l)

    cost = pl.CostEstimate(
        flops=2 * B * L_out * K * N,
        transcendentals=0,
        bytes_accessed=(in_isz * B * L_out * K + out_isz * B * L_out * N
                        + w_isz * K * N + jnp.dtype(bias.dtype).itemsize * N),
    )

    y = pl.pallas_call(
        _downpool_kernel,
        out_shape=jax.ShapeDtypeStruct((B, N, L_grid), out_dtype),
        grid=grid,
        in_specs=[
            pl.BlockSpec((None, K, tile_l), lambda b, i: (b, 0, i)),  # lane-dense x tile
            pl.BlockSpec((N, K), lambda b, i: (0, 0)),                # VMEM-resident weight
            pl.BlockSpec((N, 1), lambda b, i: (0, 0)),                # VMEM-resident bias
        ],
        out_specs=pl.BlockSpec((None, N, tile_l), lambda b, i: (b, 0, i)),
        compiler_params=pltpu.CompilerParams(
            dimension_semantics=("parallel", "parallel"),
            vmem_limit_bytes=48 * _MIB,   # tiles budgeted to ~24 MiB; safe on 64 MiB v7x
        ),
        cost_estimate=cost,
    )(xr, weight, b2)

    if needs_pad:
        y = y[:, :, :L_out]
    return y, None


def _reference_downpool(x, weight, bias, pool):
    x = x.astype(jnp.float32)
    weight = weight.astype(jnp.float32)
    bias = bias.astype(jnp.float32)
    B, H, L = x.shape
    L_out = L // pool
    xr = x.reshape(B, H, L_out, pool)
    xr = jnp.transpose(xr, (0, 2, 1, 3)).reshape(B, L_out, H * pool)
    y = jnp.einsum("blk,ok->bol", xr, weight,
                   precision=jax.lax.Precision.HIGHEST) + bias[None, :, None]
    return y


def _run_case(key, B, H, L, pool, expand, dtype=jnp.float32, atol=1e-4, rtol=1e-4):
    d_output = H * expand
    K = H * pool
    kx, kw, kb = jax.random.split(key, 3)
    x = jax.random.normal(kx, (B, H, L), dtype=jnp.float32)
    # Deterministic "Conv1d(kernel_size=1)"-style parameter init (synthetic).
    bound = 1.0 / jnp.sqrt(jnp.float32(K))
    weight = jax.random.uniform(kw, (d_output, K), jnp.float32, -bound, bound)
    bias = jax.random.uniform(kb, (d_output,), jnp.float32, -bound, bound)
    x, weight, bias = (a.astype(dtype) for a in (x, weight, bias))

    y, state = downpool_forward(x, weight, bias, pool)
    y = jax.block_until_ready(y)

    y_ref = _reference_downpool(x, weight, bias, pool)
    assert y.shape == (B, d_output, L // pool), y.shape
    assert y.dtype == dtype
    assert state is None
    assert jnp.allclose(y.astype(jnp.float32), y_ref, atol=atol, rtol=rtol), \
        "mismatch vs reference"


if __name__ == "__main__":
    key = jax.random.PRNGKey(0)
    k1, k2, k3, k4 = jax.random.split(key, 4)
    # Small config matching DownPool(d_input=4, expand=2, pool=4), seq_len=16.
    _run_case(k1, B=2, H=4, L=16, pool=4, expand=2)
    # L_out=1280: fits a single full-extent, lane-dense block (no pad, no slice).
    _run_case(k2, B=2, H=8, L=5120, pool=4, expand=2)
    # Larger channels/sequence: exercises the 128-multiple-divisor tiling along L_out
    # (L_out=16384 -> tile 4096, grid=(2, 4)) with VMEM-resident weights.
    _run_case(k3, B=2, H=64, L=65536, pool=4, expand=2, atol=5e-4, rtol=5e-4)
    # bf16 end-to-end (halved HBM traffic) with f32 MXU accumulation inside.
    _run_case(k4, B=2, H=16, L=2048, pool=2, expand=2,
              dtype=jnp.bfloat16, atol=3e-2, rtol=3e-2)
    print("KERNEL_OK")
</pallas_src>

<mosaic_0001>
module attributes {stable_mosaic.version = 11 : i64} {
  func.func @_downpool_kernel(%arg0: i32, %arg1: i32, %arg2: memref<1x16x4xf32, #tpu.memory_space<vmem>>, %arg3: memref<8x16xf32, #tpu.memory_space<vmem>>, %arg4: memref<8x1xf32, #tpu.memory_space<vmem>>, %arg5: memref<1x8x4xf32, #tpu.memory_space<vmem>>) attributes {dimension_semantics = [#tpu.dimension_semantics<parallel>, #tpu.dimension_semantics<parallel>], iteration_bounds = array<i64: 2, 1>, scalar_prefetch = 0 : i64, scratch_operands = 0 : i64, tpu.core_type = #tpu.core_type<tc>, window_params = [{transform_indices = @transform_0, window_bounds = array<i64: 1, 16, 4>}, {pipeline_mode = #tpu.pipeline_mode<synchronous>, transform_indices = @transform_1, window_bounds = array<i64: 8, 16>}, {pipeline_mode = #tpu.pipeline_mode<synchronous>, transform_indices = @transform_2, window_bounds = array<i64: 8, 1>}, {transform_indices = @transform_3, window_bounds = array<i64: 1, 8, 4>}]} {
    %c0 = arith.constant 0 : index
    %c0_0 = arith.constant 0 : index
    %0 = vector.load %arg3[%c0, %c0_0] : memref<8x16xf32, #tpu.memory_space<vmem>>, vector<8x16xf32>
    %c0_1 = arith.constant 0 : index
    %c0_2 = arith.constant 0 : index
    %c0_3 = arith.constant 0 : index
    %1 = vector.load %arg2[%c0_1, %c0_2, %c0_3] : memref<1x16x4xf32, #tpu.memory_space<vmem>>, vector<1x16x4xf32>
    %2 = vector.shape_cast %1 : vector<1x16x4xf32> to vector<16x4xf32>
    %cst = arith.constant dense<0.000000e+00> : vector<8x4xf32>
    %3 = tpu.matmul %0, %2, %cst {dimension_numbers = #tpu.dot_dimension_numbers<[1], [0], [0], [1], [0, 0, 1, 1], [], []>} : vector<8x16xf32>, vector<16x4xf32>, vector<8x4xf32> -> vector<8x4xf32>
    %c0_4 = arith.constant 0 : index
    %c0_5 = arith.constant 0 : index
    %4 = vector.load %arg4[%c0_4, %c0_5] : memref<8x1xf32, #tpu.memory_space<vmem>>, vector<8x1xf32>
    %5 = vector.broadcast %4 : vector<8x1xf32> to vector<8x4xf32>
    %6 = arith.addf %3, %5 : vector<8x4xf32>
    %c0_6 = arith.constant 0 : index
    %c0_7 = arith.constant 0 : index
    %c0_8 = arith.constant 0 : index
    %7 = vector.load %arg5[%c0_6, %c0_7, %c0_8] : memref<1x8x4xf32, #tpu.memory_space<vmem>>, vector<1x8x4xf32>
    %8 = vector.shape_cast %7 : vector<1x8x4xf32> to vector<8x4xf32>
    %9 = vector.shape_cast %6 : vector<8x4xf32> to vector<1x8x4xf32>
    tpu.vector_store %arg5[%c0_6, %c0_7, %c0_8], %9 {strides = array<i32>} : memref<1x8x4xf32, #tpu.memory_space<vmem>>, vector<1x8x4xf32>,
    return
  }
  func.func @transform_0(%arg0: i32, %arg1: i32) -> (i32, i32, i32) {
    %c0_i32 = arith.constant 0 : i32
    %c0_i32_0 = arith.constant 0 : i32
    return %arg0, %c0_i32, %arg1 : i32, i32, i32
  }
  func.func @transform_1(%arg0: i32, %arg1: i32) -> (i32, i32) {
    %c0_i32 = arith.constant 0 : i32
    %c0_i32_0 = arith.constant 0 : i32
    %c0_i32_1 = arith.constant 0 : i32
    return %c0_i32, %c0_i32_0 : i32, i32
  }
  func.func @transform_2(%arg0: i32, %arg1: i32) -> (i32, i32) {
    %c0_i32 = arith.constant 0 : i32
    %c0_i32_0 = arith.constant 0 : i32
    %c0_i32_1 = arith.constant 0 : i32
    return %c0_i32, %c0_i32_0 : i32, i32
  }
  func.func @transform_3(%arg0: i32, %arg1: i32) -> (i32, i32, i32) {
    %c0_i32 = arith.constant 0 : i32
    %c0_i32_0 = arith.constant 0 : i32
    return %arg0, %c0_i32, %arg1 : i32, i32, i32
  }
}

</mosaic_0001>

<bundles_post_ra>
// kernel: tpu_custom_call.1
= control target key start
LH: loop header
LB: loop body
LE: loop exit
PB: predicated region body
PF: predicated region fallthrough
CT: control target
= control target key end

     0   :  { %s464_s12 = smov 0   ;;  %s466_s13 = smov 0   ;;  %s503_s0 = inlined_call_operand.vmem [shape: f32[2,16,4], index: 0, kind: input, shape index: {}]   ;;  %s504_s1 = inlined_call_operand.vmem [shape: f32[8,16], index: 1, kind: input, shape index: {}]   ;;  %s505_s2 = inlined_call_operand.vmem [shape: f32[8,1], index: 2, kind: input, shape index: {}]   ;;  %s506_s3 = inlined_call_operand.vmem [shape: f32[2,8,4], index: 3, kind: output, shape index: {}]  }
   0x1   :  { %s468_s14 = smov 0  }
   0x2 LB: > { %s25_s15 = sadd.s32 1, %s434_s13  ;;  %p366_p0 = scmp.ge.s32.totalorder %s438_s14, 1  ;;  %s438_s14 = sphi %s468_s14, %s13_s14   ;;  %s434_s13 = sphi %s466_s13, %s508_s13   ;;  %s430_s12 = sphi %s464_s12, %s507_s12  }
   0x3   : > { %p27_p1 = scmp.ge.s32.totalorder %s25_s15, 2  ;;  %p156_p2 = scmp.lt.s32.totalorder %s438_s14, 3 }
   0x5   : > { %s510_s15 = smov (%p27_p1, %s25_s15), 0  ;;  %p157_p3 = pnand %p366_p0, %p156_p2 }
   0x6   : > { %p185_p4 = scmp.lt.s32.totalorder (!%p157_p3), %s430_s12, 1  ;;  %v440_v0 = vmov (!%p157_p3), 0.0|0.0   ;;  %vm441_vm0 = vmmov (!%p157_p3), 0   ;;  %v442_v1 = vmov (!%p157_p3), 0.0   ;;  %v203_v2 = vld [vmem:[%s505_s2] sm:$0xff] (!%p157_p3)  ;;  %v443_v3 = vmov (!%p157_p3), 0  }
   0x7   : > { %160 = sbr.rel (%p157_p3) target bundleno = 238 (0xee), region = 32  ;;  %384 = vmatprep.subr.bf16.mxu0 (!%p157_p3), %v440_v0  ;;  %381 = vmatprep.mubr.msk.f32.mxu0 (!%p157_p3), %vm441_vm0, %v442_v1  ;;  %v200_v7 = vld [vmem:[%s504_s1] sm:$0xff] (!%p157_p3)  ;;  %vm209_vm1 = vcmask (!%p157_p3), 130048   ;;  %vm283_vm2 = vcmask (!%p157_p3), 31744  }
   0x8   : > { %415 = vset.pattern.permute.xlu0 (!%p157_p3), %v443_v3 }
   0x9   : > { %206 = vperm.xlu0 (!%p157_p3), %415, %v203_v2  }
   0xe   : > { %s512_s12 = smov (!%p185_p4, %s430_s12), 1 }
   0xf   : > { %s373_s18 = sshll.u32 %s512_s12, 4  ;;  %s369_s24 = sshll.u32 %s512_s12, 3 }
  0x10   : > { %s192_s21 = scalar_lea.vmem %s503_s0, %s373_s18  ;;  %s199_s27 = scalar_lea.vmem %s506_s3, %s369_s24 }
  0x11   : > { %v201_v4 = vld [vmem:[%s192_s21] sm:$0xff]  ;;  %v202_v5 = vld [vmem:[%s192_s21 + $0x8] sm:$0xff] }
  0x12   : > { %v385_v6 = vpack.c.bf16 %v202_v5, %v201_v4 }
  0x14   : > { %386 = vmatpush3.bf16.msra.mxu0 %v385_v6 }
  0x17   : > { %382 = vmatmul.mubr.msk.f32.vlgmr.msra.gmra.mrb[0].mxu0 %vm209_vm1, %v200_v7 }
  0x88   : > { %v207_v8 = vpop.permute.xlu0 %206 }
  0xea   : > { %v279_v9 = vpop.f32.mrb[0].mxu0 }
  0xeb   : > { %v280_v10 = vadd.f32 %v279_v9, %v207_v8  ;;  %v383_v11 = vpop.f32.mrb[1].mxu0 }
  0xed   : > { %284 = vst.msk [vmem:[%s199_s27] sm:$0xff] %vm283_vm2, %v280_v10 }
  0xee PF: > { %s13_s14 = sadd.s32 1, %s438_s14   ;;  %s507_s12 = smov %s434_s13 }
  0xef   : > { %p10_p5 = scmp.ge.s32.totalorder %s13_s14, 4   ;;  %s508_s13 = smov %s510_s15 }
  0xf1   :  { %12 = sbr.rel (!%p10_p5) target bundleno = 2 (0x2), region = 62 }

</bundles_post_ra>
